<compile_context>
chip_gen: v7x
topology: tpu7x:2x2x1
jax: 0.10.0
libtpu: 0.0.40
codegen_flags: <defaults>
</compile_context>

<pallas_src>
import functools

import jax
import jax.numpy as jnp
from jax.experimental import pallas as pl
from jax.experimental.pallas import tpu as pltpu


def _round_up(n, m):
    return ((n + m - 1) // m) * m


def _choose_tile_b(b):
    """Batch tile size.

    Small B: one full-extent tile (no padding, no masked stores, legal
    BlockSpec because the block equals the full array dims).
    Large B: big tiles (~512 rows hits ~85% of HBM roofline on the activation
    stream) while keeping >= 2 grid steps so dimension_semantics=("parallel",)
    can shard the batch over v7x's two TensorCores (no effect on v5e/v6e).
    """
    if b <= 16:
        return b
    half = _round_up(-(-b // 2), 16)   # ceil(b/2), 16-aligned (covers bf16 sublanes)
    return min(512, half)


def _mlp_kernel(x_ref, w1_ref, b1_ref, w2_ref, b2_ref, o_ref, *, steps, d):
    """Fused: temporal select + (t d) flatten + Linear/ReLU + Linear."""
    tile_b = x_ref.shape[0]
    hid_pad = w1_ref.shape[1]

    # Layer 0:  sum_s x[:, steps[s], :] @ w1[s*d:(s+1)*d, :]
    #        == rearrange(x[:, steps, :], 'b t d -> b (t d)') @ w1
    # steps is a compile-time tuple -> static slices only, MXU matmuls with
    # f32 accumulation; no gather, no concat, no relayout.
    h = jnp.zeros((tile_b, hid_pad), jnp.float32)
    for idx, s in enumerate(steps):
        xs = x_ref[:, s, :].astype(w1_ref.dtype)
        h = h + jnp.dot(xs, w1_ref[idx * d:(idx + 1) * d, :],
                        preferred_element_type=jnp.float32)
    # bias + ReLU in f32 (v5e VPU has no bf16 elementwise).
    h = jnp.maximum(h + b1_ref[...], 0.0)

    # Layer 1 (last): Linear + bias, no activation.
    o = jnp.dot(h.astype(w2_ref.dtype), w2_ref[...],
                preferred_element_type=jnp.float32)
    o_ref[...] = (o + b2_ref[...]).astype(o_ref.dtype)


def prepare_params(params, matmul_dtype=jnp.float32):
    """One-time layout prep (NOT in the per-step forward path).

    Pads the hidden/output lanes of w1/b1/w2/b2 to multiples of 128 so every
    in-kernel matmul output, bias add and store is lane-dense, and optionally
    casts the weights to bf16 for the MXU (biases stay f32; accumulation stays
    f32 in-kernel).

    Zero padding is exact: padded hidden units get weight 0 + bias 0 ->
    ReLU(0)=0 -> contribute nothing downstream; padded output lanes are zero
    and sliced off.

    # TODO(synk): round K/N pads to 256 on v6e/v7x once hidden/out_dim grow
    # past 128 (2x256^2 MXU); 128 is already native on v5e.
    """
    w1, b1, w2, b2 = params
    in_dim, hidden = w1.shape
    out_dim = w2.shape[1]
    hid_pad = _round_up(hidden, 128)
    out_pad = _round_up(out_dim, 128)
    w1p = jnp.pad(w1, ((0, 0), (0, hid_pad - hidden))).astype(matmul_dtype)
    b1p = jnp.pad(b1, ((0, 0), (0, hid_pad - hidden))).astype(jnp.float32)
    w2p = jnp.pad(w2, ((0, hid_pad - hidden), (0, out_pad - out_dim))).astype(matmul_dtype)
    b2p = jnp.pad(b2, ((0, 0), (0, out_pad - out_dim))).astype(jnp.float32)
    return w1p, b1p, w2p, b2p


def mlp_decoder_forward(x, prepared_params, *, temporal_steps, hidden, out_dim):
    """x: (B, T, D) float32. prepared_params: from prepare_params().
    Returns (B, out_dim) float32."""
    w1p, b1p, w2p, b2p = prepared_params
    B, T, D = x.shape
    if temporal_steps == "all":
        steps = tuple(range(T))
    else:
        steps = tuple(int(s) for s in temporal_steps)
    in_dim = w1p.shape[0]
    assert in_dim == len(steps) * D, "params / temporal_steps mismatch"
    hid_pad = w1p.shape[1]
    out_pad = w2p.shape[1]

    tile_b = _choose_tile_b(B)
    grid = (pl.cdiv(B, tile_b),)

    # Advisory cost from REAL (unpadded) dims so XLA doesn't over-weight this
    # sub-microsecond custom call and serialize neighbors.
    wbytes = w1p.dtype.itemsize
    cost = pl.CostEstimate(
        flops=2 * B * (in_dim * hidden + hidden * out_dim),
        transcendentals=0,
        bytes_accessed=(4 * (B * T * D + B * out_dim + hidden + out_dim)
                        + wbytes * (in_dim * hidden + hidden * out_dim)),
    )

    # Weights/biases: constant index_map -> stay resident in VMEM across grid
    # steps; single-buffered since they never change (no double-buffer VMEM).
    # TODO(synk): once hidden/in_dim grow into the thousands, add a K-tiling
    # "arbitrary" grid axis with a pl.when-guarded f32 accumulator instead of
    # keeping full weights resident (v7x has only 64 MiB VMEM).
    resident = lambda i: (0, 0)

    out_padded = pl.pallas_call(
        functools.partial(_mlp_kernel, steps=steps, d=D),
        out_shape=jax.ShapeDtypeStruct((B, out_pad), jnp.float32),
        grid=grid,
        in_specs=[
            # Raw (B, T, D) activation slab: select/flatten happen in-kernel,
            # so there is no per-call concat/pad HBM roundtrip for x.
            pl.BlockSpec((tile_b, T, D), lambda i: (i, 0, 0)),
            pl.BlockSpec((in_dim, hid_pad), resident, pipeline_mode=pl.Buffered(1)),
            pl.BlockSpec((1, hid_pad), resident, pipeline_mode=pl.Buffered(1)),
            pl.BlockSpec((hid_pad, out_pad), resident, pipeline_mode=pl.Buffered(1)),
            pl.BlockSpec((1, out_pad), resident, pipeline_mode=pl.Buffered(1)),
        ],
        out_specs=pl.BlockSpec((tile_b, out_pad), lambda i: (i, 0)),
        compiler_params=pltpu.CompilerParams(
            dimension_semantics=("parallel",)),
        cost_estimate=cost,
    )(x, w1p, b1p, w2p, b2p)

    # TODO(synk): when the downstream op can consume the lane-padded
    # (B, out_pad) slab, return out_padded directly and fold this slice into
    # the consumer to save one more launch.
    return out_padded[:, :out_dim]


def init_params(key, in_dim, hidden, out_dim, dtype=jnp.float32):
    k1, k2, k3, k4 = jax.random.split(key, 4)
    # deterministic synthetic init (stand-in for nn.Linear's kaiming uniform)
    w1 = (jax.random.normal(k1, (in_dim, hidden), dtype) * 0.05).astype(dtype)
    b1 = (jax.random.normal(k2, (1, hidden), dtype) * 0.01).astype(dtype)
    w2 = (jax.random.normal(k3, (hidden, out_dim), dtype) * 0.05).astype(dtype)
    b2 = (jax.random.normal(k4, (1, out_dim), dtype) * 0.01).astype(dtype)
    return w1, b1, w2, b2


if __name__ == "__main__":
    # small shapes consistent with the module's (b, t, d) input
    B, T, D = 2, 8, 16
    temporal_steps = [0, 3, 7]                # list branch of the cfg
    hidden = 32
    out_dim = 10                              # cfg.model.out_dim

    key = jax.random.PRNGKey(0)
    kx, kp = jax.random.split(key)
    x = jax.random.normal(kx, (B, T, D), dtype=jnp.float32)

    in_dim = len(temporal_steps) * D
    params = init_params(kp, in_dim, hidden, out_dim)

    # pure-JAX reference for the same forward semantics
    x_sel = x[:, jnp.asarray(temporal_steps), :].reshape(B, -1)
    h_ref = jnp.maximum(x_sel @ params[0] + params[1], 0.0)
    y_ref = h_ref @ params[2] + params[3]

    # --- f32 path (default; B=2 is launch-overhead bound, bf16 is noise) ----
    prepared_f32 = prepare_params(params)                     # one-time pads
    fwd = jax.jit(functools.partial(mlp_decoder_forward,
                                    temporal_steps=tuple(temporal_steps),
                                    hidden=hidden, out_dim=out_dim))
    y = jax.block_until_ready(fwd(x, prepared_f32))
    assert y.shape == (B, out_dim)
    assert jnp.allclose(y, y_ref, atol=1e-5, rtol=1e-5)

    # --- bf16 MXU path (the win once B is matmul / bandwidth bound) ---------
    prepared_bf16 = prepare_params(params, matmul_dtype=jnp.bfloat16)
    fwd_bf16 = jax.jit(functools.partial(mlp_decoder_forward,
                                         temporal_steps=tuple(temporal_steps),
                                         hidden=hidden, out_dim=out_dim))
    y_bf16 = jax.block_until_ready(fwd_bf16(x, prepared_bf16))
    assert y_bf16.shape == (B, out_dim)
    assert jnp.allclose(y_bf16, y_ref, atol=2e-2, rtol=5e-2)

    print("KERNEL_OK")
</pallas_src>

<mosaic_0001>
module attributes {stable_mosaic.version = 11 : i64} {
  func.func @_mlp_kernel(%arg0: i32, %arg1: memref<2x8x16xf32, #tpu.memory_space<vmem>>, %arg2: memref<48x128xf32, #tpu.memory_space<vmem>>, %arg3: memref<1x128xf32, #tpu.memory_space<vmem>>, %arg4: memref<128x128xf32, #tpu.memory_space<vmem>>, %arg5: memref<1x128xf32, #tpu.memory_space<vmem>>, %arg6: memref<2x128xf32, #tpu.memory_space<vmem>>) attributes {dimension_semantics = [#tpu.dimension_semantics<parallel>], iteration_bounds = array<i64: 1>, scalar_prefetch = 0 : i64, scratch_operands = 0 : i64, tpu.core_type = #tpu.core_type<tc>, window_params = [{transform_indices = @transform_0, window_bounds = array<i64: 2, 8, 16>}, {pipeline_mode = #tpu.pipeline_mode<synchronous>, transform_indices = @transform_1, window_bounds = array<i64: 48, 128>}, {pipeline_mode = #tpu.pipeline_mode<synchronous>, transform_indices = @transform_2, window_bounds = array<i64: 1, 128>}, {pipeline_mode = #tpu.pipeline_mode<synchronous>, transform_indices = @transform_3, window_bounds = array<i64: 128, 128>}, {pipeline_mode = #tpu.pipeline_mode<synchronous>, transform_indices = @transform_4, window_bounds = array<i64: 1, 128>}, {transform_indices = @transform_5, window_bounds = array<i64: 2, 128>}]} {
    %cst = arith.constant 0.000000e+00 : f32
    %0 = vector.broadcast %cst : f32 to vector<2x128xf32>
    %c0 = arith.constant 0 : index
    %c0_0 = arith.constant 0 : index
    %c0_1 = arith.constant 0 : index
    %1 = vector.load %arg1[%c0, %c0_0, %c0_1] : memref<2x8x16xf32, #tpu.memory_space<vmem>>, vector<2x1x16xf32>
    %2 = vector.shape_cast %1 : vector<2x1x16xf32> to vector<2x16xf32>
    %c0_2 = arith.constant 0 : index
    %c0_3 = arith.constant 0 : index
    %3 = vector.load %arg2[%c0_2, %c0_3] : memref<48x128xf32, #tpu.memory_space<vmem>>, vector<16x128xf32>
    %cst_4 = arith.constant dense<0.000000e+00> : vector<2x128xf32>
    %4 = tpu.matmul %2, %3, %cst_4 {dimension_numbers = #tpu.dot_dimension_numbers<[1], [0], [0], [1], [0, 0, 1, 1], [], []>} : vector<2x16xf32>, vector<16x128xf32>, vector<2x128xf32> -> vector<2x128xf32>
    %5 = arith.addf %0, %4 : vector<2x128xf32>
    %c0_5 = arith.constant 0 : index
    %c3 = arith.constant 3 : index
    %c0_6 = arith.constant 0 : index
    %6 = vector.load %arg1[%c0_5, %c3, %c0_6] : memref<2x8x16xf32, #tpu.memory_space<vmem>>, vector<2x1x16xf32>
    %7 = vector.shape_cast %6 : vector<2x1x16xf32> to vector<2x16xf32>
    %c16 = arith.constant 16 : index
    %c0_7 = arith.constant 0 : index
    %8 = vector.load %arg2[%c16, %c0_7] : memref<48x128xf32, #tpu.memory_space<vmem>>, vector<16x128xf32>
    %cst_8 = arith.constant dense<0.000000e+00> : vector<2x128xf32>
    %9 = tpu.matmul %7, %8, %cst_8 {dimension_numbers = #tpu.dot_dimension_numbers<[1], [0], [0], [1], [0, 0, 1, 1], [], []>} : vector<2x16xf32>, vector<16x128xf32>, vector<2x128xf32> -> vector<2x128xf32>
    %10 = arith.addf %5, %9 : vector<2x128xf32>
    %c0_9 = arith.constant 0 : index
    %c7 = arith.constant 7 : index
    %c0_10 = arith.constant 0 : index
    %11 = vector.load %arg1[%c0_9, %c7, %c0_10] : memref<2x8x16xf32, #tpu.memory_space<vmem>>, vector<2x1x16xf32>
    %12 = vector.shape_cast %11 : vector<2x1x16xf32> to vector<2x16xf32>
    %c32 = arith.constant 32 : index
    %c0_11 = arith.constant 0 : index
    %13 = vector.load %arg2[%c32, %c0_11] : memref<48x128xf32, #tpu.memory_space<vmem>>, vector<16x128xf32>
    %cst_12 = arith.constant dense<0.000000e+00> : vector<2x128xf32>
    %14 = tpu.matmul %12, %13, %cst_12 {dimension_numbers = #tpu.dot_dimension_numbers<[1], [0], [0], [1], [0, 0, 1, 1], [], []>} : vector<2x16xf32>, vector<16x128xf32>, vector<2x128xf32> -> vector<2x128xf32>
    %15 = arith.addf %10, %14 : vector<2x128xf32>
    %c0_13 = arith.constant 0 : index
    %c0_14 = arith.constant 0 : index
    %16 = vector.load %arg3[%c0_13, %c0_14] : memref<1x128xf32, #tpu.memory_space<vmem>>, vector<1x128xf32>
    %17 = vector.broadcast %16 : vector<1x128xf32> to vector<2x128xf32>
    %18 = arith.addf %15, %17 : vector<2x128xf32>
    %cst_15 = arith.constant 0.000000e+00 : f32
    %19 = vector.broadcast %cst_15 : f32 to vector<2x128xf32>
    %20 = arith.maximumf %18, %19 : vector<2x128xf32>
    %c0_16 = arith.constant 0 : index
    %c0_17 = arith.constant 0 : index
    %21 = vector.load %arg4[%c0_16, %c0_17] : memref<128x128xf32, #tpu.memory_space<vmem>>, vector<128x128xf32>
    %cst_18 = arith.constant dense<0.000000e+00> : vector<2x128xf32>
    %22 = tpu.matmul %20, %21, %cst_18 {dimension_numbers = #tpu.dot_dimension_numbers<[1], [0], [0], [1], [0, 0, 1, 1], [], []>} : vector<2x128xf32>, vector<128x128xf32>, vector<2x128xf32> -> vector<2x128xf32>
    %c0_19 = arith.constant 0 : index
    %c0_20 = arith.constant 0 : index
    %23 = vector.load %arg5[%c0_19, %c0_20] : memref<1x128xf32, #tpu.memory_space<vmem>>, vector<1x128xf32>
    %24 = vector.broadcast %23 : vector<1x128xf32> to vector<2x128xf32>
    %25 = arith.addf %22, %24 : vector<2x128xf32>
    %c0_21 = arith.constant 0 : index
    %c0_22 = arith.constant 0 : index
    %26 = vector.load %arg6[%c0_21, %c0_22] : memref<2x128xf32, #tpu.memory_space<vmem>>, vector<2x128xf32>
    tpu.vector_store %arg6[%c0_21, %c0_22], %25 {strides = array<i32>} : memref<2x128xf32, #tpu.memory_space<vmem>>, vector<2x128xf32>,
    return
  }
  func.func @transform_0(%arg0: i32) -> (i32, i32, i32) {
    %c0_i32 = arith.constant 0 : i32
    %c0_i32_0 = arith.constant 0 : i32
    %c0_i32_1 = arith.constant 0 : i32
    return %arg0, %c0_i32, %c0_i32_0 : i32, i32, i32
  }
  func.func @transform_1(%arg0: i32) -> (i32, i32) {
    %c0_i32 = arith.constant 0 : i32
    %c0_i32_0 = arith.constant 0 : i32
    %c0_i32_1 = arith.constant 0 : i32
    return %c0_i32, %c0_i32_0 : i32, i32
  }
  func.func @transform_2(%arg0: i32) -> (i32, i32) {
    %c0_i32 = arith.constant 0 : i32
    %c0_i32_0 = arith.constant 0 : i32
    %c0_i32_1 = arith.constant 0 : i32
    return %c0_i32, %c0_i32_0 : i32, i32
  }
  func.func @transform_3(%arg0: i32) -> (i32, i32) {
    %c0_i32 = arith.constant 0 : i32
    %c0_i32_0 = arith.constant 0 : i32
    %c0_i32_1 = arith.constant 0 : i32
    return %c0_i32, %c0_i32_0 : i32, i32
  }
  func.func @transform_4(%arg0: i32) -> (i32, i32) {
    %c0_i32 = arith.constant 0 : i32
    %c0_i32_0 = arith.constant 0 : i32
    %c0_i32_1 = arith.constant 0 : i32
    return %c0_i32, %c0_i32_0 : i32, i32
  }
  func.func @transform_5(%arg0: i32) -> (i32, i32) {
    %c0_i32 = arith.constant 0 : i32
    %c0_i32_0 = arith.constant 0 : i32
    return %arg0, %c0_i32 : i32, i32
  }
}

</mosaic_0001>

<bundles_post_ra>
// kernel: mlp_decoder_forward.1
= control target key start
LH: loop header
LB: loop body
LE: loop exit
PB: predicated region body
PF: predicated region fallthrough
CT: control target
= control target key end

     0   :  { %10 = vsyncpa [#allocation3], 0  ;;  %s777_s0 = inlined_call_operand.hbm [shape: f32[2,8,16], index: 0, kind: input, shape index: {}]   ;;  %s778_s1 = inlined_call_operand.hbm [shape: f32[48,128], index: 1, kind: input, shape index: {}]   ;;  %s779_s2 = inlined_call_operand.vmem [shape: f32[1,128], index: 2, kind: input, shape index: {}]   ;;  %s780_s3 = inlined_call_operand.hbm [shape: f32[128,128], index: 3, kind: input, shape index: {}]   ;;  %s781_s4 = inlined_call_operand.vmem [shape: f32[1,128], index: 4, kind: input, shape index: {}]   ;;  %s782_s5 = inlined_call_operand.hbm [shape: f32[2,128], index: 5, kind: output, shape index: {}]  }
   0x1   :  { %11 = vsyncpa [#allocation6], 0 }
   0x2   :  { %12 = vsyncpa [#allocation4], 0  ;;  %s647_s18 = smov [#allocation5]   ;;  %s648_s20 = smov [#allocation2]  }
   0x3   :  { %s30_s19 = sshll.u32 %s647_s18, 4  ;;  %s18_s21 = sshll.u32 %s648_s20, 4  ;;  %s31_s19 = int_to_ptr.vmem [resolvable:$true] %s30_s19  ;;  %s686_s21 = int_to_ptr.vmem [resolvable:$true] %s18_s21 }
   0x4   :  { %s553_s24 = scalar_lea.hbm %s778_s1, 768 }
   0x5   :  { %p554_p0 = scmp.ne.s32.totalorder %s778_s1, %s553_s24  ;;  %p557_p1 = scmp.lt.u32.totalorder %s553_s24, %s778_s1 }
   0x7   :  { %p559_p2 = pnand %p557_p1, %p554_p0 }
   0x9   :  { %562 = shalt.err (!%p559_p2)
}
   0xa   :  { %s563_s29 = scalar_lea.vmem %s31_s19, 768  ;;  %p568_p4 = scmp.lt.s32.totalorder %s31_s19, %s31_s19 }
   0xb   :  { %p564_p3 = scmp.ne.s32.totalorder %s31_s19, %s563_s29  ;;  %p569_p5 = scmp.lt.s32.totalorder %s563_s29, %s563_s29 }
   0xd   :  { %p570_p6 = por %p569_p5, %p568_p4 }
   0xf   :  { %p571_p7 = pnand %p570_p6, %p564_p3 }
  0x11   :  { %574 = shalt.err (!%p571_p7)
}
  0x12   :  { %s649_s30 = smov 128   ;;  %s650_s6 = smov 8  }
  0x13   :  { %36 = dma.hbm_to_vmem [thread:$0]  %s778_s1, 768, %s31_s19, [#allocation6], %s649_s30, %s649_s30, %s650_s6  }
  0x14   :  { %s575_s11 = scalar_lea.hbm %s777_s0, 256 }
  0x15   :  { %p576_p8 = scmp.ne.s32.totalorder %s777_s0, %s575_s11  ;;  %p579_p9 = scmp.lt.u32.totalorder %s575_s11, %s777_s0 }
  0x17   :  { %p581_p10 = pnand %p579_p9, %p576_p8 }
  0x19   :  { %584 = shalt.err (!%p581_p10)
}
  0x1a   :  { %s585_s16 = scalar_lea.vmem %s686_s21, 256  ;;  %p590_p12 = scmp.lt.s32.totalorder %s686_s21, %s686_s21 }
  0x1b   :  { %p586_p11 = scmp.ne.s32.totalorder %s686_s21, %s585_s16  ;;  %p591_p13 = scmp.lt.s32.totalorder %s585_s16, %s585_s16 }
  0x1d   :  { %p592_p0 = por %p591_p13, %p590_p12 }
  0x1f   :  { %p593_p1 = pnand %p592_p0, %p586_p11 }
  0x21   :  { %596 = shalt.err (!%p593_p1)
}
  0x22   :  { %24 = dma.hbm_to_vmem [thread:$0]  %s777_s0, 256, %s686_s21, [#allocation3], %s649_s30, %s649_s30, %s650_s6  }
  0x23   :  { %s651_s18 = smov [#allocation7]   ;;  %s597_s23 = scalar_lea.hbm %s780_s3, 2048 }
  0x24   :  { %s44_s19 = sshll.u32 %s651_s18, 4  ;;  %p598_p2 = scmp.ne.s32.totalorder %s780_s3, %s597_s23  ;;  %s45_s19 = int_to_ptr.vmem [resolvable:$true] %s44_s19 }
  0x25   :  { %p601_p3 = scmp.lt.u32.totalorder %s597_s23, %s780_s3 }
  0x27   :  { %p603_p4 = pnand %p601_p3, %p598_p2 }
  0x29   :  { %606 = shalt.err (!%p603_p4)
}
  0x2a   :  { %s607_s28 = scalar_lea.vmem %s45_s19, 2048  ;;  %p612_p6 = scmp.lt.s32.totalorder %s45_s19, %s45_s19 }
  0x2b   :  { %p608_p5 = scmp.ne.s32.totalorder %s45_s19, %s607_s28  ;;  %p613_p7 = scmp.lt.s32.totalorder %s607_s28, %s607_s28 }
  0x2d   :  { %p614_p8 = por %p613_p7, %p612_p6 }
  0x2f   :  { %p615_p9 = pnand %p614_p8, %p608_p5 }
  0x31   :  { %618 = shalt.err (!%p615_p9)
}
  0x32   :  { %50 = dma.hbm_to_vmem [thread:$0]  %s780_s3, 2048, %s45_s19, [#allocation6], %s649_s30, %s649_s30, %s650_s6  }
  0x33   :  { %641 = dma.done.wait [#allocation3], 256  }
  0x34   :  { %642 = vsyncadd [#allocation3], 4294967040 }
  0x35   :  { %643 = dma.done.wait [#allocation6], 2816  }
  0x36   :  { %644 = vsyncadd [#allocation6], 4294964480  ;;  %v652_v0 = vmov 0.0|0.0   ;;  %vm653_vm0 = vmmov 0   ;;  %v654_v1 = vmov 0.0   ;;  %v68_v2 = vld [vmem:[#allocation5 + $0x10] sm:$0xff] }
  0x37   :  { %511 = vmatprep.subr.bf16.mxu0 %v652_v0  ;;  %459 = vmatprep.mubr.msk.f32.mxu0 %vm653_vm0, %v654_v1  ;;  %v69_v3 = vld [vmem:[#allocation5 + $0x18] sm:$0xff]  ;;  %v66_v4 = vld [vmem:[#allocation2 + $0x3] sm:$0x1]  ;;  %vm73_vm1 = vcmask 1041409   ;;  %v64_v7 = vld [vmem:[#allocation5] sm:$0xff]  ;;  %vm75_vm2 = vcmask 130048  }
  0x38   :  { %520 = vmatprep.subr.bf16.mxu1 %v652_v0  ;;  %508 = vmatprep.mubr.msk.f32.mxu1 %vm653_vm0, %v654_v1  ;;  %v512_v5 = vpack.c.bf16 %v69_v3, %v68_v2  ;;  %v67_v6 = vld [vmem:[#allocation2 + $0xb] sm:$0x1]  ;;  %v65_v8 = vld [vmem:[#allocation5 + $0x8] sm:$0xff]  ;;  %v63_v10 = vld [vmem:[#allocation2 + $0x8] sm:$0x1]  ;;  %s655_s7 = smov [#allocation8]  }
  0x39   :  { %v72_v9 = vrot.slane %v67_v6, 7  ;;  %v515_v11 = vpack.c.bf16 %v65_v8, %v64_v7  ;;  %v62_v12 = vld [vmem:[#allocation2] sm:$0x1]  ;;  %v150_v13 = vrot.slane %v63_v10, 7  ;;  %v226_v14 = vld [vmem:[#allocation5 + $0x20] sm:$0xff]  ;;  %v227_v15 = vld [vmem:[#allocation5 + $0x28] sm:$0xff] }
  0x3a   :  { %513 = vmatpush3.bf16.msra.mxu0 %v512_v5  ;;  %v225_v17 = vld [vmem:[#allocation2 + $0xf] sm:$0x1]  ;;  %v314_v18 = vld [vmem:[#allocation7] sm:$0xff]  ;;  %v316_v21 = vld [vmem:[#allocation7 + $0x10] sm:$0xff]  ;;  %v518_v24 = vpack.c.bf16 %v227_v15, %v226_v14  ;;  %s414_s8 = sshll.u32 %s655_s7, 4  ;;  %s415_s8 = int_to_ptr.vmem [resolvable:$true] %s414_s8 }
  0x3b   :  { %v74_v16 = vsel %vm73_vm1, %v72_v9, %v66_v4  ;;  %514 = vmatprep.subr.bf16.mxu0 %v652_v0  ;;  %v315_v19 = vld [vmem:[#allocation7 + $0x8] sm:$0xff]  ;;  %v317_v22 = vld [vmem:[#allocation7 + $0x18] sm:$0xff]  ;;  %v151_v23 = vsel %vm73_vm1, %v150_v13, %v62_v12  ;;  %v230_v25 = vrot.slane %v225_v17, 7  ;;  %v224_v26 = vld [vmem:[#allocation2 + $0x7] sm:$0x1]  ;;  %s619_s9 = scalar_lea.vmem %s415_s8, 32  ;;  %p624_p11 = scmp.lt.s32.totalorder %s415_s8, %s415_s8 }
  0x3c   :  { %v521_v20 = vpack.c.bf16 %v315_v19, %v314_v18  ;;  %v524_v27 = vpack.c.bf16 %v317_v22, %v316_v21  ;;  %v318_v28 = vld [vmem:[#allocation7 + $0x20] sm:$0xff]  ;;  %v319_v29 = vld [vmem:[#allocation7 + $0x28] sm:$0xff]  ;;  %v320_v32 = vld [vmem:[#allocation7 + $0x30] sm:$0xff]  ;;  %p620_p10 = scmp.ne.s32.totalorder %s415_s8, %s619_s9  ;;  %p625_p12 = scmp.lt.s32.totalorder %s619_s9, %s619_s9 }
  0x3d   :  { %460 = vmatmul.mubr.msk.f32.vlgmr.msra.gmra.mrb[0].mxu0 %vm75_vm2, %v74_v16  ;;  %v231_v30 = vsel %vm73_vm1, %v230_v25, %v224_v26  ;;  %v527_v31 = vpack.c.bf16 %v319_v29, %v318_v28  ;;  %v321_v33 = vld [vmem:[#allocation7 + $0x38] sm:$0xff]  ;;  %v322_v35 = vld [vmem:[#allocation7 + $0x40] sm:$0xff]  ;;  %v323_v36 = vld [vmem:[#allocation7 + $0x48] sm:$0xff] }
  0x3e   :  { %516 = vmatpush3.bf16.msra.mxu0 %v515_v11  ;;  %466 = vmatprep.mubr.msk.f32.mxu0 %vm653_vm0, %v654_v1  ;;  %v530_v34 = vpack.c.bf16 %v321_v33, %v320_v32  ;;  %v533_v37 = vpack.c.bf16 %v323_v36, %v322_v35  ;;  %v324_v38 = vld [vmem:[#allocation7 + $0x50] sm:$0xff]  ;;  %v325_v39 = vld [vmem:[#allocation7 + $0x58] sm:$0xff]  ;;  %v326_v41 = vld [vmem:[#allocation7 + $0x60] sm:$0xff]  ;;  %p626_p13 = por %p625_p12, %p624_p11 }
  0x3f   :  { %517 = vmatprep.subr.bf16.mxu0 %v652_v0  ;;  %522 = vmatpush3.bf16.msra.mxu1 %v521_v20  ;;  %v536_v40 = vpack.c.bf16 %v325_v39, %v324_v38  ;;  %v327_v42 = vld [vmem:[#allocation7 + $0x68] sm:$0xff]  ;;  %v328_v44 = vld [vmem:[#allocation7 + $0x70] sm:$0xff]  ;;  %v329_v45 = vld [vmem:[#allocation7 + $0x78] sm:$0xff] }
  0x40   :  { %523 = vmatprep.subr.bf16.mxu1 %v652_v0  ;;  %v539_v43 = vpack.c.bf16 %v327_v42, %v326_v41  ;;  %v542_v46 = vpack.c.bf16 %v329_v45, %v328_v44  ;;  %v427_v53 = vld [vmem:[%s779_s2] ss:$0 sm:$0xff]  ;;  %p627_p0 = pnand %p626_p13, %p620_p10 }
  0x41   :  { %467 = vmatmul.mubr.msk.f32.vlgmr.msra.gmra.mrb[2].mxu0 %vm75_vm2, %v151_v23  ;;  %v428_v58 = vld [vmem:[%s781_s4] ss:$0 sm:$0xff] }
  0x42   :  { %519 = vmatpush3.bf16.msra.mxu0 %v518_v24  ;;  %473 = vmatprep.mubr.msk.f32.mxu0 %vm653_vm0, %v654_v1 }
  0x43   :  { %525 = vmatpush3.bf16.msra.mxu1 %v524_v27 }
  0x44   :  { %526 = vmatprep.subr.bf16.mxu1 %v652_v0 }
  0x45   :  { %474 = vmatmul.mubr.msk.f32.vlgmr.msra.gmra.mrb[4].mxu0 %vm75_vm2, %v231_v30 }
  0x47   :  { %528 = vmatpush3.bf16.msra.mxu1 %v527_v31 }
  0x48   :  { %529 = vmatprep.subr.bf16.mxu1 %v652_v0 }
  0x4b   :  { %531 = vmatpush3.bf16.msra.mxu1 %v530_v34 }
  0x4c   :  { %532 = vmatprep.subr.bf16.mxu1 %v652_v0 }
  0x4f   :  { %534 = vmatpush3.bf16.msra.mxu1 %v533_v37 }
  0x50   :  { %535 = vmatprep.subr.bf16.mxu1 %v652_v0 }
  0x53   :  { %537 = vmatpush3.bf16.msra.mxu1 %v536_v40 }
  0x54   :  { %538 = vmatprep.subr.bf16.mxu1 %v652_v0 }
  0x57   :  { %540 = vmatpush3.bf16.msra.mxu1 %v539_v43 }
  0x58   :  { %541 = vmatprep.subr.bf16.mxu1 %v652_v0 }
  0x5b   :  { %543 = vmatpush3.bf16.msra.mxu1 %v542_v46 }
 0x110   :  { %v144_v47 = vpop.f32.mrb[0].mxu0 }
 0x111   :  { %v461_v48 = vpop.f32.mrb[1].mxu0 }
 0x114   :  { %v220_v49 = vpop.f32.mrb[2].mxu0 }
 0x115   :  { %v221_v50 = vadd.f32 %v220_v49, %v144_v47  ;;  %v468_v51 = vpop.f32.mrb[3].mxu0 }
 0x118   :  { %v300_v52 = vpop.f32.mrb[4].mxu0 }
 0x119   :  { %v304_v54 = vadd.f32 %v300_v52, %v221_v50  ;;  %v475_v55 = vpop.f32.mrb[5].mxu0 }
 0x11b   :  { %v312_v56 = vadd.f32 %v427_v53, %v304_v54 }
 0x11d   :  { %v313_v57 = vmax.f32 %v312_v56, 0.0 }
 0x11f   :  { %509 = vmatmul.mubr.f32.vlgmr.msra.gmra.mrb[0].mxu1 %v313_v57 }
 0x1f2   :  { %v403_v59 = vpop.f32.mrb[0].mxu1 }
 0x1f3   :  { %v404_v60 = vadd.f32 %v428_v58, %v403_v59  ;;  %v510_v61 = vpop.f32.mrb[1].mxu1 }
 0x1f5   :  { %407 = vst [vmem:[#allocation8] sm:$0x3] %v404_v60 }
 0x1f6   :  { %630 = shalt.err (!%p627_p0)
}
 0x1f7   :  { %s631_s11 = scalar_lea.hbm %s782_s5, 32 }
 0x1f8   :  { %p632_p1 = scmp.ne.s32.totalorder %s782_s5, %s631_s11  ;;  %p635_p2 = scmp.lt.u32.totalorder %s631_s11, %s782_s5 }
 0x1fa   :  { %p637_p3 = pnand %p635_p2, %p632_p1 }
 0x1fc   :  { %640 = shalt.err (!%p637_p3)
}
 0x1fd   :  { %417 = dma.vmem_to_hbm [thread:$0]  %s415_s8, 32, %s782_s5, [#allocation4]  }
 0x1fe   :  { %645 = dma.done.wait [#allocation4], 32  }
 0x1ff   :  { %646 = vsyncadd [#allocation4], 4294967264 }
 0x200   :  { %421 = vsyncpa [#allocation3], 1 }
 0x201   :  { %422 = vsyncpa [#allocation6], 1 }
 0x202   :  { %423 = vsyncpa [#allocation4], 1 }

</bundles_post_ra>
